<compile_context>
chip_gen: v6e
topology: v6e:2x2x1
jax: 0.10.0
libtpu: 0.0.40
codegen_flags: <defaults>
</compile_context>

<pallas_src>
import functools

import jax
import jax.numpy as jnp
import numpy as np
from jax.experimental import pallas as pl
from jax.experimental.pallas import tpu as pltpu

W_ENTROPY = 0.36  # entropy-penalty weight from the module's __init__ default


def _round_up(x, m):
    return (x + m - 1) // m * m


def _learned_mixin_kernel(f_feat_ref, w_col_ref, f_pred_ref, g_pred_ref,
                          labels_ref, fc_b_ref, out_ref, *, w_coef, b_total):
    tb = f_feat_ref.shape[0]
    C = f_pred_ref.shape[1]

    # ---- fc: Linear(feat_dim, 1) on the MXU -------------------------------
    f_feat = f_feat_ref[...].astype(jnp.float32)                     # [TB, D]
    w_col = w_col_ref[...].astype(jnp.float32)                       # [D, 1]
    fc = jnp.dot(f_feat, w_col, preferred_element_type=jnp.float32)  # [TB, 1]
    fc = fc + fc_b_ref[0, 0]

    # softplus(fc), numerically stable
    factor = jnp.maximum(fc, 0.0) + jnp.log(1.0 + jnp.exp(-jnp.abs(fc)))

    g = g_pred_ref[...].astype(jnp.float32) * factor                  # [TB, C]
    z = f_pred_ref[...].astype(jnp.float32) + g                       # [TB, C]

    # ---- cross_entropy(z, labels), per row ---------------------------------
    zmax = jnp.max(z, axis=-1, keepdims=True)
    e_z = jnp.exp(z - zmax)
    lse_z = zmax + jnp.log(jnp.sum(e_z, axis=-1, keepdims=True))      # [TB, 1]

    labels = labels_ref[...]                                          # [TB, 1] int32
    cols = jax.lax.broadcasted_iota(jnp.int32, (tb, C), 1)
    picked = jnp.sum(jnp.where(cols == labels, z, 0.0),
                     axis=-1, keepdims=True)                          # [TB, 1]
    loss_row = lse_z - picked

    # ---- entropy of the scaled bias distribution (reuses exp(g - gmax)) ----
    gmax = jnp.max(g, axis=-1, keepdims=True)
    e_g = jnp.exp(g - gmax)
    s_g = jnp.sum(e_g, axis=-1, keepdims=True)
    inv_s = pl.reciprocal(s_g, approx=False)
    # H = log(s_g) - sum(e_g * (g - gmax)) / s_g
    ent_row = jnp.log(s_g) - jnp.sum(e_g * (g - gmax),
                                     axis=-1, keepdims=True) * inv_s  # [TB, 1]

    # mask rows that are batch padding (normalize by the GLOBAL batch size)
    row = pl.program_id(0) * tb + jax.lax.broadcasted_iota(jnp.int32, (tb, 1), 0)
    valid = (row < b_total).astype(jnp.float32)

    out_ref[...] = valid * (loss_row + w_coef * ent_row) * (1.0 / b_total)


def learned_mixin_forward(f_feat, g_feat, labels, f_pred, g_pred,
                          fc_weight, fc_bias, w=W_ENTROPY, block_b=128):
    """Pallas implementation of LearnedMixin.forward. Returns a scalar f32.

    g_feat is accepted for API parity with the PyTorch module but unused,
    exactly as in the reference forward.
    """
    del g_feat  # unused by the reference forward as well
    B = f_feat.shape[0]
    f_feat = f_feat.reshape(B, -1)
    f_pred = f_pred.reshape(B, -1)
    g_pred = g_pred.reshape(B, -1)
    D = f_feat.shape[1]
    C = f_pred.shape[1]

    # Batch tile: multiple of 8 sublanes, capped at block_b; pad B up to it.
    tb = min(block_b, _round_up(B, 8))
    b_pad = _round_up(B, tb)
    pad = b_pad - B
    if pad:
        f_feat = jnp.pad(f_feat, ((0, pad), (0, 0)))
        f_pred = jnp.pad(f_pred, ((0, pad), (0, 0)))
        g_pred = jnp.pad(g_pred, ((0, pad), (0, 0)))
        labels = jnp.pad(labels, ((0, pad),))

    labels2d = labels.reshape(b_pad, 1).astype(jnp.int32)
    w_col = fc_weight.reshape(-1, 1)                       # [D, 1]
    b_smem = fc_bias.reshape(1, 1).astype(jnp.float32)     # [1, 1] scalar in SMEM

    num_tiles = b_pad // tb

    per_row = pl.pallas_call(
        functools.partial(_learned_mixin_kernel, w_coef=float(w), b_total=B),
        out_shape=jax.ShapeDtypeStruct((b_pad, 1), jnp.float32),
        grid=(num_tiles,),
        in_specs=[
            pl.BlockSpec((tb, D), lambda i: (i, 0)),        # f_feat tile
            pl.BlockSpec((D, 1), lambda i: (0, 0)),         # fc weight column
            pl.BlockSpec((tb, C), lambda i: (i, 0)),        # f_pred tile
            pl.BlockSpec((tb, C), lambda i: (i, 0)),        # g_pred tile
            pl.BlockSpec((tb, 1), lambda i: (i, 0)),        # labels tile
            pl.BlockSpec(memory_space=pltpu.MemorySpace.SMEM),  # fc bias scalar
        ],
        out_specs=pl.BlockSpec((tb, 1), lambda i: (i, 0)),
        compiler_params=pltpu.CompilerParams(
            dimension_semantics=("parallel",)),
    )(f_feat, w_col, f_pred, g_pred, labels2d, b_smem)

    # Tiny final reduction over [b_pad, 1] per-row contributions.
    return jnp.sum(per_row)


def _reference_forward(f_feat, labels, f_pred, g_pred, fc_weight, fc_bias,
                       w=W_ENTROPY):
    """Pure-JAX reference mirroring the PyTorch forward, for a sanity check."""
    B = f_feat.shape[0]
    f_feat = f_feat.reshape(B, -1)
    f_pred = f_pred.reshape(B, -1)
    g_pred = g_pred.reshape(B, -1)
    factor = jax.nn.softplus(f_feat @ fc_weight.reshape(-1, 1) + fc_bias)  # [B,1]
    g = g_pred * factor
    z = f_pred + g
    logp = jax.nn.log_softmax(z, axis=1)
    loss = -jnp.mean(jnp.take_along_axis(logp, labels[:, None], axis=1))
    bias_lp = jax.nn.log_softmax(g, axis=1)
    entropy = -jnp.mean(jnp.sum(jnp.exp(bias_lp) * bias_lp, axis=1))
    return loss + w * entropy


if __name__ == "__main__":
    B, FEAT_DIM, C = 8, 128, 16

    key = jax.random.PRNGKey(0)
    k1, k2, k3, k4, k5, k6 = jax.random.split(key, 6)

    f_feat = jax.random.normal(k1, (B, FEAT_DIM), dtype=jnp.float32)
    g_feat = jax.random.normal(k2, (B, FEAT_DIM), dtype=jnp.float32)  # unused
    f_pred = jax.random.normal(k3, (B, C), dtype=jnp.float32)
    g_pred = jax.random.normal(k4, (B, C), dtype=jnp.float32)
    labels = jax.random.randint(k5, (B,), 0, C, dtype=jnp.int32)

    # Deterministic nn.Linear(feat_dim, 1) parameters (synthetic init).
    bound = 1.0 / np.sqrt(FEAT_DIM)
    kw, kb = jax.random.split(k6)
    fc_weight = jax.random.uniform(kw, (1, FEAT_DIM), jnp.float32, -bound, bound)
    fc_bias = jax.random.uniform(kb, (1,), jnp.float32, -bound, bound)

    out = learned_mixin_forward(f_feat, g_feat, labels, f_pred, g_pred,
                                fc_weight, fc_bias)
    out = jax.block_until_ready(out)

    ref = _reference_forward(f_feat, labels, f_pred, g_pred, fc_weight, fc_bias)
    np.testing.assert_allclose(np.asarray(out), np.asarray(ref),
                               rtol=1e-3, atol=1e-3)

    print("KERNEL_OK")
</pallas_src>

<mosaic_0001>
module attributes {stable_mosaic.version = 11 : i64} {
  func.func @_learned_mixin_kernel(%arg0: i32, %arg1: memref<8x128xf32, #tpu.memory_space<vmem>>, %arg2: memref<128x1xf32, #tpu.memory_space<vmem>>, %arg3: memref<8x16xf32, #tpu.memory_space<vmem>>, %arg4: memref<8x16xf32, #tpu.memory_space<vmem>>, %arg5: memref<8x1xi32, #tpu.memory_space<vmem>>, %arg6: memref<1x1xf32, #tpu.memory_space<smem>>, %arg7: memref<8x1xf32, #tpu.memory_space<vmem>>) attributes {dimension_semantics = [#tpu.dimension_semantics<parallel>], iteration_bounds = array<i64: 1>, scalar_prefetch = 0 : i64, scratch_operands = 0 : i64, tpu.core_type = #tpu.core_type<tc>, window_params = [{transform_indices = @transform_0, window_bounds = array<i64: 8, 128>}, {pipeline_mode = #tpu.pipeline_mode<synchronous>, transform_indices = @transform_1, window_bounds = array<i64: 128, 1>}, {transform_indices = @transform_2, window_bounds = array<i64: 8, 16>}, {transform_indices = @transform_3, window_bounds = array<i64: 8, 16>}, {transform_indices = @transform_4, window_bounds = array<i64: 8, 1>}, {transform_indices = @transform_5, window_bounds = array<i64: 1, 1>}, {transform_indices = @transform_6, window_bounds = array<i64: 8, 1>}]} {
    %c0 = arith.constant 0 : index
    %c0_0 = arith.constant 0 : index
    %0 = vector.load %arg1[%c0, %c0_0] : memref<8x128xf32, #tpu.memory_space<vmem>>, vector<8x128xf32>
    %c0_1 = arith.constant 0 : index
    %c0_2 = arith.constant 0 : index
    %1 = vector.load %arg2[%c0_1, %c0_2] : memref<128x1xf32, #tpu.memory_space<vmem>>, vector<128x1xf32>
    %cst = arith.constant dense<0.000000e+00> : vector<8x1xf32>
    %2 = tpu.matmul %0, %1, %cst {dimension_numbers = #tpu.dot_dimension_numbers<[1], [0], [0], [1], [0, 0, 1, 1], [], []>} : vector<8x128xf32>, vector<128x1xf32>, vector<8x1xf32> -> vector<8x1xf32>
    %c0_3 = arith.constant 0 : index
    %c0_4 = arith.constant 0 : index
    %3 = memref.load %arg6[%c0_3, %c0_4] : memref<1x1xf32, #tpu.memory_space<smem>>
    %4 = vector.broadcast %3 : f32 to vector<8x1xf32>
    %5 = arith.addf %2, %4 : vector<8x1xf32>
    %cst_5 = arith.constant 0.000000e+00 : f32
    %6 = vector.broadcast %cst_5 : f32 to vector<8x1xf32>
    %7 = arith.maximumf %5, %6 : vector<8x1xf32>
    %8 = math.absf %5 : vector<8x1xf32>
    %cst_6 = arith.constant 0.000000e+00 : f32
    %9 = vector.broadcast %cst_6 : f32 to vector<8x1xf32>
    %10 = arith.subf %9, %8 : vector<8x1xf32>
    %11 = math.exp %10 : vector<8x1xf32>
    %cst_7 = arith.constant 1.000000e+00 : f32
    %12 = vector.broadcast %cst_7 : f32 to vector<8x1xf32>
    %13 = arith.addf %12, %11 : vector<8x1xf32>
    %14 = math.log %13 : vector<8x1xf32>
    %15 = arith.addf %7, %14 : vector<8x1xf32>
    %c0_8 = arith.constant 0 : index
    %c0_9 = arith.constant 0 : index
    %16 = vector.load %arg4[%c0_8, %c0_9] : memref<8x16xf32, #tpu.memory_space<vmem>>, vector<8x16xf32>
    %17 = vector.broadcast %15 : vector<8x1xf32> to vector<8x16xf32>
    %18 = arith.mulf %16, %17 : vector<8x16xf32>
    %c0_10 = arith.constant 0 : index
    %c0_11 = arith.constant 0 : index
    %19 = vector.load %arg3[%c0_10, %c0_11] : memref<8x16xf32, #tpu.memory_space<vmem>>, vector<8x16xf32>
    %20 = arith.addf %19, %18 : vector<8x16xf32>
    %cst_12 = arith.constant dense<0xFF800000> : vector<8xf32>
    %21 = vector.multi_reduction <maximumf>, %20, %cst_12 [1] : vector<8x16xf32> to vector<8xf32>
    %22 = vector.shape_cast %21 : vector<8xf32> to vector<8x1xf32>
    %23 = vector.broadcast %22 : vector<8x1xf32> to vector<8x16xf32>
    %24 = arith.subf %20, %23 : vector<8x16xf32>
    %25 = math.exp %24 : vector<8x16xf32>
    %cst_13 = arith.constant dense<0.000000e+00> : vector<8xf32>
    %26 = vector.multi_reduction <add>, %25, %cst_13 [1] : vector<8x16xf32> to vector<8xf32>
    %27 = vector.shape_cast %26 : vector<8xf32> to vector<8x1xf32>
    %28 = math.log %27 : vector<8x1xf32>
    %29 = arith.addf %22, %28 : vector<8x1xf32>
    %c0_14 = arith.constant 0 : index
    %c0_15 = arith.constant 0 : index
    %30 = vector.load %arg5[%c0_14, %c0_15] : memref<8x1xi32, #tpu.memory_space<vmem>>, vector<8x1xi32>
    %31 = tpu.iota {dimensions = array<i32: 1>} : vector<8x16xi32>
    %32 = vector.broadcast %30 : vector<8x1xi32> to vector<8x16xi32>
    %33 = arith.cmpi eq, %31, %32 : vector<8x16xi32>
    %cst_16 = arith.constant 0.000000e+00 : f32
    %34 = vector.broadcast %cst_16 : f32 to vector<8x16xf32>
    %35 = arith.select %33, %20, %34 : vector<8x16xi1>, vector<8x16xf32>
    %cst_17 = arith.constant dense<0.000000e+00> : vector<8xf32>
    %36 = vector.multi_reduction <add>, %35, %cst_17 [1] : vector<8x16xf32> to vector<8xf32>
    %37 = vector.shape_cast %36 : vector<8xf32> to vector<8x1xf32>
    %38 = arith.subf %29, %37 : vector<8x1xf32>
    %cst_18 = arith.constant dense<0xFF800000> : vector<8xf32>
    %39 = vector.multi_reduction <maximumf>, %18, %cst_18 [1] : vector<8x16xf32> to vector<8xf32>
    %40 = vector.shape_cast %39 : vector<8xf32> to vector<8x1xf32>
    %41 = vector.broadcast %40 : vector<8x1xf32> to vector<8x16xf32>
    %42 = arith.subf %18, %41 : vector<8x16xf32>
    %43 = math.exp %42 : vector<8x16xf32>
    %cst_19 = arith.constant dense<0.000000e+00> : vector<8xf32>
    %44 = vector.multi_reduction <add>, %43, %cst_19 [1] : vector<8x16xf32> to vector<8xf32>
    %45 = vector.shape_cast %44 : vector<8xf32> to vector<8x1xf32>
    %46 = tpu.reciprocal %45 : vector<8x1xf32> -> vector<8x1xf32>
    %47 = math.log %45 : vector<8x1xf32>
    %48 = vector.broadcast %40 : vector<8x1xf32> to vector<8x16xf32>
    %49 = arith.subf %18, %48 : vector<8x16xf32>
    %50 = arith.mulf %43, %49 : vector<8x16xf32>
    %cst_20 = arith.constant dense<0.000000e+00> : vector<8xf32>
    %51 = vector.multi_reduction <add>, %50, %cst_20 [1] : vector<8x16xf32> to vector<8xf32>
    %52 = vector.shape_cast %51 : vector<8xf32> to vector<8x1xf32>
    %53 = arith.mulf %52, %46 : vector<8x1xf32>
    %54 = arith.subf %47, %53 : vector<8x1xf32>
    %c8_i32 = arith.constant 8 : i32
    %55 = arith.muli %arg0, %c8_i32 : i32
    %56 = tpu.iota {dimensions = array<i32: 0>} : vector<8x1xi32>
    %57 = vector.broadcast %55 : i32 to vector<8x1xi32>
    %58 = arith.addi %57, %56 : vector<8x1xi32>
    %c8_i32_21 = arith.constant 8 : i32
    %59 = vector.broadcast %c8_i32_21 : i32 to vector<8x1xi32>
    %60 = arith.cmpi slt, %58, %59 : vector<8x1xi32>
    %61 = arith.extui %60 : vector<8x1xi1> to vector<8x1xi32>
    %62 = arith.sitofp %61 : vector<8x1xi32> to vector<8x1xf32>
    %cst_22 = arith.constant 3.600000e-01 : f32
    %63 = vector.broadcast %cst_22 : f32 to vector<8x1xf32>
    %64 = arith.mulf %63, %54 : vector<8x1xf32>
    %65 = arith.addf %38, %64 : vector<8x1xf32>
    %66 = arith.mulf %62, %65 : vector<8x1xf32>
    %cst_23 = arith.constant 1.250000e-01 : f32
    %67 = vector.broadcast %cst_23 : f32 to vector<8x1xf32>
    %68 = arith.mulf %66, %67 : vector<8x1xf32>
    %c0_24 = arith.constant 0 : index
    %c0_25 = arith.constant 0 : index
    %69 = vector.load %arg7[%c0_24, %c0_25] : memref<8x1xf32, #tpu.memory_space<vmem>>, vector<8x1xf32>
    tpu.vector_store %arg7[%c0_24, %c0_25], %68 {strides = array<i32>} : memref<8x1xf32, #tpu.memory_space<vmem>>, vector<8x1xf32>,
    return
  }
  func.func @transform_0(%arg0: i32) -> (i32, i32) {
    %c0_i32 = arith.constant 0 : i32
    %c0_i32_0 = arith.constant 0 : i32
    return %arg0, %c0_i32 : i32, i32
  }
  func.func @transform_1(%arg0: i32) -> (i32, i32) {
    %c0_i32 = arith.constant 0 : i32
    %c0_i32_0 = arith.constant 0 : i32
    %c0_i32_1 = arith.constant 0 : i32
    return %c0_i32, %c0_i32_0 : i32, i32
  }
  func.func @transform_2(%arg0: i32) -> (i32, i32) {
    %c0_i32 = arith.constant 0 : i32
    %c0_i32_0 = arith.constant 0 : i32
    return %arg0, %c0_i32 : i32, i32
  }
  func.func @transform_3(%arg0: i32) -> (i32, i32) {
    %c0_i32 = arith.constant 0 : i32
    %c0_i32_0 = arith.constant 0 : i32
    return %arg0, %c0_i32 : i32, i32
  }
  func.func @transform_4(%arg0: i32) -> (i32, i32) {
    %c0_i32 = arith.constant 0 : i32
    %c0_i32_0 = arith.constant 0 : i32
    return %arg0, %c0_i32 : i32, i32
  }
  func.func @transform_5(%arg0: i32) -> (i32, i32) {
    %c0_i32 = arith.constant 0 : i32
    %c0_i32_0 = arith.constant 0 : i32
    %c0_i32_1 = arith.constant 0 : i32
    return %c0_i32, %c0_i32_0 : i32, i32
  }
  func.func @transform_6(%arg0: i32) -> (i32, i32) {
    %c0_i32 = arith.constant 0 : i32
    %c0_i32_0 = arith.constant 0 : i32
    return %arg0, %c0_i32 : i32, i32
  }
}

</mosaic_0001>

<bundles_post_ra>
// kernel: tpu_custom_call.1
= control target key start
LH: loop header
LB: loop body
LE: loop exit
PB: predicated region body
PF: predicated region fallthrough
CT: control target
= control target key end

     0   :  { %v263_v0 = vmov 0.0   ;;  %vm264_vm0 = vmmov 0   ;;  %v265_v18 = vmov 0   ;;  %vm131_vm1 = vcmask 130048   ;;  %s373_s1 = inlined_call_operand.vmem [shape: f32[128,1], index: 1, kind: input, shape index: {}]   ;;  %s374_s0 = inlined_call_operand.vmem [shape: f32[8,128], index: 0, kind: input, shape index: {}]   ;;  %s375_s5 = inlined_call_operand.<no memory space> [shape: f32[1,1], index: 5, kind: input, shape index: {}]   ;;  %s376_s3 = inlined_call_operand.vmem [shape: f32[8,16], index: 3, kind: input, shape index: {}]   ;;  %s377_s2 = inlined_call_operand.vmem [shape: f32[8,16], index: 2, kind: input, shape index: {}]   ;;  %s378_s4 = inlined_call_operand.vmem [shape: s32[8,1], index: 4, kind: input, shape index: {}]   ;;  %s379_s6 = inlined_call_operand.vmem [shape: f32[8,1], index: 6, kind: output, shape index: {}]  }
   0x1   :  { %209 = vmatprep.subr.mxu0 %v263_v0  ;;  %v40_v1 = vld [vmem:[%s373_s1 + $0x78] sm:$0xff]  ;;  %v39_v2 = vld [vmem:[%s373_s1 + $0x70] sm:$0xff]  ;;  %241 = vmatprep.mubr.msk.f32.mxu0 %vm264_vm0, %v263_v0  ;;  %v38_v3 = vld [vmem:[%s373_s1 + $0x68] sm:$0xff]  ;;  %v42_v19 = vstv %s375_s5  ;;  %v145_v46 = vlaneseq  ;;  %vm186_vm3 = vcmask 7168  }
   0x2   :  { %210 = vmatpush3.msra.mxu0 %v40_v1  ;;  %v37_v4 = vld [vmem:[%s373_s1 + $0x60] sm:$0xff]  ;;  %v36_v5 = vld [vmem:[%s373_s1 + $0x58] sm:$0xff]  ;;  %v35_v6 = vld [vmem:[%s373_s1 + $0x50] sm:$0xff]  ;;  %247 = vset.pattern.permute.xlu0 %v265_v18 }
   0x3   :  { %211 = vmatprep.subr.mxu0 %v263_v0  ;;  %v34_v7 = vld [vmem:[%s373_s1 + $0x48] sm:$0xff]  ;;  %v33_v8 = vld [vmem:[%s373_s1 + $0x40] sm:$0xff]  ;;  %v32_v9 = vld [vmem:[%s373_s1 + $0x38] sm:$0xff]  ;;  %248 = vset.pattern.permute.xlu1 %v265_v18  ;;  %v146_v47 = vand.u32 127, %v145_v46 }
   0x4   :  { %212 = vmatpush3.msra.mxu0 %v39_v2  ;;  %v31_v10 = vld [vmem:[%s373_s1 + $0x30] sm:$0xff]  ;;  %v30_v11 = vld [vmem:[%s373_s1 + $0x28] sm:$0xff]  ;;  %v29_v12 = vld [vmem:[%s373_s1 + $0x20] sm:$0xff] }
   0x5   :  { %213 = vmatprep.subr.mxu0 %v263_v0  ;;  %v28_v13 = vld [vmem:[%s373_s1 + $0x18] sm:$0xff]  ;;  %v27_v14 = vld [vmem:[%s373_s1 + $0x10] sm:$0xff]  ;;  %v26_v15 = vld [vmem:[%s373_s1 + $0x8] sm:$0xff] }
   0x6   :  { %214 = vmatpush3.msra.mxu0 %v38_v3  ;;  %v25_v16 = vld [vmem:[%s373_s1] sm:$0xff] }
   0x7   :  { %215 = vmatprep.subr.mxu0 %v263_v0  ;;  %v24_v17 = vld [vmem:[%s374_s0] sm:$0xff] }
   0x8   :  { %216 = vmatpush3.msra.mxu0 %v37_v4  ;;  %v122_v32 = vld [vmem:[%s376_s3] sm:$0xff] }
   0x9   :  { %217 = vmatprep.subr.mxu0 %v263_v0  ;;  %v129_v34 = vld [vmem:[%s377_s2] sm:$0xff] }
   0xa   :  { %218 = vmatpush3.msra.mxu0 %v36_v5  ;;  %v144_v39 = vld [vmem:[%s378_s4] sm:$0xff] }
   0xb   :  { %219 = vmatprep.subr.mxu0 %v263_v0 }
   0xc   :  { %220 = vmatpush3.msra.mxu0 %v35_v6 }
   0xd   :  { %221 = vmatprep.subr.mxu0 %v263_v0 }
   0xe   :  { %222 = vmatpush3.msra.mxu0 %v34_v7 }
   0xf   :  { %223 = vmatprep.subr.mxu0 %v263_v0 }
  0x10   :  { %224 = vmatpush3.msra.mxu0 %v33_v8 }
  0x11   :  { %225 = vmatprep.subr.mxu0 %v263_v0 }
  0x12   :  { %226 = vmatpush3.msra.mxu0 %v32_v9 }
  0x13   :  { %227 = vmatprep.subr.mxu0 %v263_v0 }
  0x14   :  { %228 = vmatpush3.msra.mxu0 %v31_v10 }
  0x15   :  { %229 = vmatprep.subr.mxu0 %v263_v0 }
  0x16   :  { %230 = vmatpush3.msra.mxu0 %v30_v11 }
  0x17   :  { %231 = vmatprep.subr.mxu0 %v263_v0 }
  0x18   :  { %232 = vmatpush3.msra.mxu0 %v29_v12 }
  0x19   :  { %233 = vmatprep.subr.mxu0 %v263_v0 }
  0x1a   :  { %234 = vmatpush3.msra.mxu0 %v28_v13 }
  0x1b   :  { %235 = vmatprep.subr.mxu0 %v263_v0 }
  0x1c   :  { %236 = vmatpush3.msra.mxu0 %v27_v14 }
  0x1d   :  { %237 = vmatprep.subr.mxu0 %v263_v0 }
  0x1e   :  { %238 = vmatpush3.msra.mxu0 %v26_v15 }
  0x1f   :  { %239 = vmatprep.subr.mxu0 %v263_v0 }
  0x20   :  { %240 = vmatpush3.msra.mxu0 %v25_v16 }
  0x21   :  { %242 = vmatmul.mubr.f32.vlgmr.msra.gmra.mxu0 %v24_v17 }
  0xe1   :  { %v109_v20 = vpop.f32.mrf.mxu0 }
  0xe2   :  { %v110_v21 = vadd.f32 %v109_v20, %v42_v19 }
  0xe3   :  { %v243_v22 = vpop.f32.mrf.mxu0 }
  0xe4   :  { %v114_v23 = vand.u32 2147483647, %v110_v21  ;;  %v113_v29 = vmax.f32 %v110_v21, 0.0 }
  0xe6   :  { %v115_v24 = vsub.f32 0.0, %v114_v23 }
  0xe8   :  { %v116_v25 = vmul.f32 1.442695, %v115_v24 }
  0xea   :  { %249 = vpow2.f32 %v116_v25 }
  0xf7   :  { %v250_v26 = vpop.eup %249 }
  0xf8   :  { %v118_v27 = vadd.f32 1.0, %v250_v26 }
  0xfa   :  { %251 = vlog2.f32 %v118_v27 }
 0x107   :  { %v252_v28 = vpop.eup %251 }
 0x108   :  { %v120_v30 = vmul.f32 0.6931472, %v252_v28 }
 0x10a   :  { %v121_v31 = vadd.f32 %v120_v30, %v113_v29 }
 0x10c   :  { %125 = vperm.xlu0 %247, %v121_v31  }
 0x187   :  { %v126_v33 = vpop.permute.xlu0 %125 }
 0x188   :  { %v128_v35 = vmul.f32 %v126_v33, %v122_v32 }
 0x18a   :  { %v156_v36 = vsel %vm131_vm1, %v128_v35, -inf  ;;  %v130_v37 = vadd.f32 %v129_v34, %v128_v35 }
 0x18b   :  { %157 = vmax.xlane.f32.xlu1 %v156_v36 }
 0x18c   :  { %v132_v38 = vsel %vm131_vm1, %v130_v37, -inf }
 0x18d   :  { %133 = vmax.xlane.f32.xlu0 %v132_v38 }
 0x19c   :  { %148 = vperm.xlu1 %248, %v144_v39  }
 0x214   :  { %v158_v40 = vpop.xlane.xlu1 %157 }
 0x215   :  { %v159_v41 = vsub.f32 %v128_v35, %v158_v40 }
 0x216   :  { %v134_v42 = vpop.xlane.xlu0 %133 }
 0x217   :  { %v160_v43 = vmul.f32 1.442695, %v159_v41  ;;  %v135_v44 = vsub.f32 %v130_v37, %v134_v42 }
 0x218   :  { %v149_v49 = vpop.permute.xlu1 %148 }
 0x219   :  { %253 = vpow2.f32 %v160_v43  ;;  %v136_v45 = vmul.f32 1.442695, %v135_v44  ;;  %vm150_vm2 = vcmp.eq.s32.totalorder %v146_v47, %v149_v49 }
 0x21a   :  { %v151_v55 = vsel %vm150_vm2, %v130_v37, 0.0 }
 0x21b   :  { %255 = vpow2.f32 %v136_v45  ;;  %v152_v56 = vsel %vm131_vm1, %v151_v55, 0.0 }
 0x226   :  { %v254_v48 = vpop.eup %253 }
 0x227   :  { %v162_v50 = vsel %vm131_vm1, %v254_v48, 0.0  ;;  %v168_v51 = vmul.f32 %v254_v48, %v159_v41 }
 0x228   :  { %v256_v52 = vpop.eup %255  ;;  %163 = vadd.xlane.f32.xlu0 %v162_v50 }
 0x229   :  { %v138_v53 = vsel %vm131_vm1, %v256_v52, 0.0  ;;  %v169_v54 = vsel %vm131_vm1, %v168_v51, 0.0 }
 0x22a   :  { %139 = vadd.xlane.f32.xlu1 %v138_v53 }
 0x22c   :  { %170 = vadd.xlane.f32.xlu0 %v169_v54 }
 0x230   :  { %153 = vadd.xlane.f32.xlu0 %v152_v56 }
 0x2b1   :  { %v164_v57 = vpop.xlane.xlu0 %163 }
 0x2b2   :  { %257 = vrcp.f32 %v164_v57 }
 0x2b3   :  { %259 = vlog2.f32 %v164_v57  ;;  %v140_v58 = vpop.xlane.xlu1 %139 }
 0x2b4   :  { %261 = vlog2.f32 %v140_v58 }
 0x2b5   :  { %v171_v60 = vpop.xlane.xlu0 %170 }
 0x2b9   :  { %v154_v4 = vpop.xlane.xlu0 %153 }
 0x2bf   :  { %v258_v59 = vpop.eup %257 }
 0x2c0   :  { %v260_v61 = vpop.eup %259  ;;  %v172_v62 = vmul.f32 %v258_v59, %v171_v60 }
 0x2c1   :  { %v262_v63 = vpop.eup %261  ;;  %v167_v0 = vmul.f32 0.6931472, %v260_v61 }
 0x2c2   :  { %v142_v1 = vmul.f32 0.6931472, %v262_v63 }
 0x2c3   :  { %v173_v2 = vsub.f32 %v167_v0, %v172_v62 }
 0x2c4   :  { %v143_v3 = vadd.f32 %v142_v1, %v134_v42 }
 0x2c5   :  { %v182_v5 = vmul.f32 0.36, %v173_v2 }
 0x2c6   :  { %v155_v6 = vsub.f32 %v143_v3, %v154_v4 }
 0x2c8   :  { %v183_v7 = vadd.f32 %v182_v5, %v155_v6 }
 0x2ca   :  { %v185_v8 = vmul.f32 0.125, %v183_v7 }
 0x2cc   :  { %187 = vst.msk [vmem:[%s379_s6] sm:$0xff] %vm186_vm3, %v185_v8 }

</bundles_post_ra>
